<compile_context>
chip_gen: v6e
topology: v6e:2x2x1
jax: 0.10.0
libtpu: 0.0.40
codegen_flags: <defaults>
</compile_context>

<pallas_src>
import functools
from math import sqrt

import jax
import jax.numpy as jnp
from jax import lax
from jax.experimental import pallas as pl
from jax.experimental.pallas import tpu as pltpu


def _flash_attention_kernel(q_ref, k_ref, v_ref, o_ref,
                            m_ref, l_ref, acc_ref,
                            *, scale, mask_flag, n_heads, e_dim, d_dim):
    # q_ref: (1, tq, H*E)  k_ref: (1, tk, H*E)  v_ref: (1, tk, H*D)
    # o_ref: (1, tq, H*D)
    # m_ref/l_ref: (H, tq, 1) f32 scratch, acc_ref: (H, tq, D) f32 scratch
    tq = q_ref.shape[1]
    tk = k_ref.shape[1]

    qi = pl.program_id(1)
    ki = pl.program_id(2)
    n_k = pl.num_programs(2)

    q_start = qi * tq
    kv_start = ki * tk

    @pl.when(ki == 0)
    def _init():
        m_ref[...] = jnp.full_like(m_ref, -jnp.inf)
        l_ref[...] = jnp.zeros_like(l_ref)
        acc_ref[...] = jnp.zeros_like(acc_ref)

    def _compute():
        if mask_flag:
            # Hoisted out of the head loop (JAX does not CSE broadcast_in_dim).
            row = lax.broadcasted_iota(jnp.int32, (tq, tk), 0) + q_start
            col = lax.broadcasted_iota(jnp.int32, (tq, tk), 1) + kv_start
            masked = col > row  # TriangularCausalMask (global indices)
        # Static unrolled loop over heads (H is small in time-series models).
        for h in range(n_heads):
            # Fold the softmax scale into Q (L*E muls instead of L*S).
            q_h = q_ref[0, :, h * e_dim:(h + 1) * e_dim] * scale   # (tq, E)
            k_h = k_ref[0, :, h * e_dim:(h + 1) * e_dim]           # (tk, E)
            v_h = v_ref[0, :, h * d_dim:(h + 1) * d_dim]           # (tk, D)

            # QK^T: contract E of both operands, no explicit transpose of K.
            s = lax.dot_general(q_h, k_h, (((1,), (1,)), ((), ())),
                                preferred_element_type=jnp.float32)  # (tq, tk)
            if mask_flag:
                s = jnp.where(masked, -jnp.inf, s)

            # Online-softmax update.
            m_prev = m_ref[h]                                        # (tq, 1)
            m_new = jnp.maximum(m_prev, jnp.max(s, axis=-1, keepdims=True))
            alpha = jnp.exp(m_prev - m_new)
            p = jnp.exp(s - m_new)                                   # (tq, tk) f32
            l_ref[h] = alpha * l_ref[h] + jnp.sum(p, axis=-1, keepdims=True)
            acc_ref[h] = alpha * acc_ref[h] + jnp.dot(
                p.astype(v_h.dtype), v_h, preferred_element_type=jnp.float32)
            m_ref[h] = m_new

    if mask_flag:
        # Skip KV blocks that lie entirely above the causal diagonal.
        @pl.when(kv_start <= q_start + tq - 1)
        def _():
            _compute()
    else:
        _compute()

    @pl.when(ki == n_k - 1)
    def _finalize():
        for h in range(n_heads):
            inv_l = pl.reciprocal(l_ref[h], approx=True)  # EUP slot, ~free
            o_ref[0, :, h * d_dim:(h + 1) * d_dim] = (
                acc_ref[h] * inv_l).astype(o_ref.dtype)


def _pick_tile(n):
    # Largest divisor of n from a friendly list; fall back to the full length.
    # (On v6e/v7x a 256 query tile can be tried if profiling shows MXU drain
    #  bubbles; 128 keeps vreg pressure low and is native on v5e.)
    for t in (128, 64, 32, 16, 8):
        if t <= n and n % t == 0:
            return t
    return n


def full_attention(queries, keys, values, attn_mask=None,
                   mask_flag=True, scale=None):
    """queries [B,L,H,E], keys [B,S,H,E], values [B,S,H,D] -> V [B,L,H,D]."""
    B, L, H, E = queries.shape
    _, S, _, D = values.shape
    if attn_mask is not None and mask_flag:
        # TODO(synk): explicit caller-provided attn_mask tensors are not
        # supported; only the built-in TriangularCausalMask path is implemented.
        raise NotImplementedError("explicit attn_mask is not supported")
    scale = float(scale) if scale is not None else 1.0 / sqrt(E)

    tq = _pick_tile(L)
    tk = _pick_tile(S)

    # Metadata-only reshapes (no HBM transpose round-trips): minor dim becomes
    # lane-dense H*E / H*D.
    q2 = queries.reshape(B, L, H * E)
    k2 = keys.reshape(B, S, H * E)
    v2 = values.reshape(B, S, H * D)

    kernel = functools.partial(_flash_attention_kernel, scale=scale,
                               mask_flag=mask_flag, n_heads=H,
                               e_dim=E, d_dim=D)

    out_flat = pl.pallas_call(
        kernel,
        out_shape=jax.ShapeDtypeStruct((B, L, H * D), queries.dtype),
        grid_spec=pltpu.PrefetchScalarGridSpec(
            num_scalar_prefetch=0,
            grid=(B, L // tq, S // tk),
            in_specs=[
                pl.BlockSpec((1, tq, H * E), lambda b, qi, ki: (b, qi, 0)),
                pl.BlockSpec((1, tk, H * E), lambda b, qi, ki: (b, ki, 0)),
                pl.BlockSpec((1, tk, H * D), lambda b, qi, ki: (b, ki, 0)),
            ],
            out_specs=pl.BlockSpec((1, tq, H * D), lambda b, qi, ki: (b, qi, 0)),
            scratch_shapes=[
                pltpu.VMEM((H, tq, 1), jnp.float32),   # running max  m
                pltpu.VMEM((H, tq, 1), jnp.float32),   # running sum  l
                pltpu.VMEM((H, tq, D), jnp.float32),   # output accumulator
            ],
        ),
        compiler_params=pltpu.CompilerParams(
            dimension_semantics=("parallel", "parallel", "arbitrary"),
            vmem_limit_bytes=32 * 1024 * 1024,
        ),
    )(q2, k2, v2)

    return out_flat.reshape(B, L, H, D)


def _reference(queries, keys, values, mask_flag=True, scale=None):
    B, L, H, E = queries.shape
    _, S, _, D = values.shape
    scale = scale if scale is not None else 1.0 / sqrt(E)
    scores = jnp.einsum('blhe,bshe->bhls',
                        queries.astype(jnp.float32), keys.astype(jnp.float32))
    if mask_flag:
        mask = jnp.triu(jnp.ones((L, S), dtype=bool), k=1)
        scores = jnp.where(mask[None, None], -jnp.inf, scores)
    A = jax.nn.softmax(scale * scores, axis=-1)
    V = jnp.einsum('bhls,bshd->blhd', A, values.astype(jnp.float32))
    return V.astype(queries.dtype)


def _check(key, B, L, S, H, E, D, mask_flag):
    kq, kk, kv = jax.random.split(key, 3)
    queries = jax.random.normal(kq, (B, L, H, E), dtype=jnp.float32)
    keys = jax.random.normal(kk, (B, S, H, E), dtype=jnp.float32)
    values = jax.random.normal(kv, (B, S, H, D), dtype=jnp.float32)

    out = full_attention(queries, keys, values, attn_mask=None,
                         mask_flag=mask_flag, scale=None)
    out = jax.block_until_ready(out)
    ref = _reference(queries, keys, values, mask_flag=mask_flag, scale=None)

    assert out.shape == (B, L, H, D)
    # Tolerance accounts for the approximate (EUP) reciprocal in the final
    # softmax normalization and online-softmax accumulation order.
    assert jnp.allclose(out, ref, atol=1e-2, rtol=1e-2), \
        f"mismatch vs reference (mask_flag={mask_flag}, L={L}, S={S})"


if __name__ == "__main__":
    key = jax.random.PRNGKey(0)
    k1, k2, k3 = jax.random.split(key, 3)

    # Small shapes matching the module's convention.
    _check(k1, B=2, L=8, S=8, H=4, E=32, D=32, mask_flag=True)
    _check(k2, B=2, L=8, S=8, H=4, E=32, D=32, mask_flag=False)
    # Larger sequence to exercise multi-block tiling, online softmax and
    # causal block skipping (tq = tk = 128 -> 2x2 blocks).
    _check(k3, B=1, L=256, S=256, H=2, E=32, D=32, mask_flag=True)

    print("KERNEL_OK")
</pallas_src>

<mosaic_0001>
module attributes {stable_mosaic.version = 11 : i64} {
  func.func @_flash_attention_kernel(%arg0: i32, %arg1: i32, %arg2: i32, %arg3: memref<1x8x128xf32, #tpu.memory_space<vmem>>, %arg4: memref<1x8x128xf32, #tpu.memory_space<vmem>>, %arg5: memref<1x8x128xf32, #tpu.memory_space<vmem>>, %arg6: memref<1x8x128xf32, #tpu.memory_space<vmem>>, %arg7: memref<4x8x1xf32, #tpu.memory_space<vmem>>, %arg8: memref<4x8x1xf32, #tpu.memory_space<vmem>>, %arg9: memref<4x8x32xf32, #tpu.memory_space<vmem>>) attributes {dimension_semantics = [#tpu.dimension_semantics<parallel>, #tpu.dimension_semantics<parallel>, #tpu.dimension_semantics<arbitrary>], iteration_bounds = array<i64: 2, 1, 1>, scalar_prefetch = 0 : i64, scratch_operands = 3 : i64, tpu.core_type = #tpu.core_type<tc>, window_params = [{transform_indices = @transform_0, window_bounds = array<i64: 1, 8, 128>}, {transform_indices = @transform_1, window_bounds = array<i64: 1, 8, 128>}, {transform_indices = @transform_2, window_bounds = array<i64: 1, 8, 128>}, {transform_indices = @transform_3, window_bounds = array<i64: 1, 8, 128>}]} {
    %c8_i32 = arith.constant 8 : i32
    %0 = arith.muli %arg1, %c8_i32 : i32
    %c8_i32_0 = arith.constant 8 : i32
    %1 = arith.muli %arg2, %c8_i32_0 : i32
    %c0_i32 = arith.constant 0 : i32
    %2 = arith.cmpi eq, %arg2, %c0_i32 : i32
    %3 = arith.extui %2 : i1 to i32
    %c0_i32_1 = arith.constant 0 : i32
    %4 = arith.cmpi ne, %3, %c0_i32_1 : i32
    scf.if %4 {
      %cst = arith.constant 0xFF800000 : f32
      %13 = vector.broadcast %cst : f32 to vector<4x8x1xf32>
      %c0 = arith.constant 0 : index
      %c0_6 = arith.constant 0 : index
      %c0_7 = arith.constant 0 : index
      %14 = vector.load %arg7[%c0, %c0_6, %c0_7] : memref<4x8x1xf32, #tpu.memory_space<vmem>>, vector<4x8x1xf32>
      tpu.vector_store %arg7[%c0, %c0_6, %c0_7], %13 {strides = array<i32>} : memref<4x8x1xf32, #tpu.memory_space<vmem>>, vector<4x8x1xf32>,
      %cst_8 = arith.constant 0.000000e+00 : f32
      %15 = vector.broadcast %cst_8 : f32 to vector<4x8x1xf32>
      %c0_9 = arith.constant 0 : index
      %c0_10 = arith.constant 0 : index
      %c0_11 = arith.constant 0 : index
      %16 = vector.load %arg8[%c0_9, %c0_10, %c0_11] : memref<4x8x1xf32, #tpu.memory_space<vmem>>, vector<4x8x1xf32>
      tpu.vector_store %arg8[%c0_9, %c0_10, %c0_11], %15 {strides = array<i32>} : memref<4x8x1xf32, #tpu.memory_space<vmem>>, vector<4x8x1xf32>,
      %cst_12 = arith.constant 0.000000e+00 : f32
      %17 = vector.broadcast %cst_12 : f32 to vector<4x8x32xf32>
      %c0_13 = arith.constant 0 : index
      %c0_14 = arith.constant 0 : index
      %c0_15 = arith.constant 0 : index
      %18 = vector.load %arg9[%c0_13, %c0_14, %c0_15] : memref<4x8x32xf32, #tpu.memory_space<vmem>>, vector<4x8x32xf32>
      tpu.vector_store %arg9[%c0_13, %c0_14, %c0_15], %17 {strides = array<i32>} : memref<4x8x32xf32, #tpu.memory_space<vmem>>, vector<4x8x32xf32>,
    } else {
    }
    %c8_i32_2 = arith.constant 8 : i32
    %5 = arith.addi %0, %c8_i32_2 : i32
    %c1_i32 = arith.constant 1 : i32
    %6 = arith.subi %5, %c1_i32 : i32
    %7 = arith.cmpi sle, %1, %6 : i32
    %8 = arith.extui %7 : i1 to i32
    %c0_i32_3 = arith.constant 0 : i32
    %9 = arith.cmpi ne, %8, %c0_i32_3 : i32
    scf.if %9 {
      %13 = tpu.iota {dimensions = array<i32: 0>} : vector<8x8xi32>
      %14 = vector.broadcast %0 : i32 to vector<8x8xi32>
      %15 = arith.addi %13, %14 : vector<8x8xi32>
      %16 = tpu.iota {dimensions = array<i32: 1>} : vector<8x8xi32>
      %17 = vector.broadcast %1 : i32 to vector<8x8xi32>
      %18 = arith.addi %16, %17 : vector<8x8xi32>
      %19 = arith.cmpi sgt, %18, %15 : vector<8x8xi32>
      %c0 = arith.constant 0 : index
      %c0_6 = arith.constant 0 : index
      %c0_7 = arith.constant 0 : index
      %20 = vector.load %arg3[%c0, %c0_6, %c0_7] : memref<1x8x128xf32, #tpu.memory_space<vmem>>, vector<1x8x32xf32>
      %21 = vector.shape_cast %20 : vector<1x8x32xf32> to vector<8x32xf32>
      %cst = arith.constant 0.176776692 : f32
      %22 = vector.broadcast %cst : f32 to vector<8x32xf32>
      %23 = arith.mulf %21, %22 : vector<8x32xf32>
      %c0_8 = arith.constant 0 : index
      %c0_9 = arith.constant 0 : index
      %c0_10 = arith.constant 0 : index
      %24 = vector.load %arg4[%c0_8, %c0_9, %c0_10] : memref<1x8x128xf32, #tpu.memory_space<vmem>>, vector<1x8x32xf32>
      %25 = vector.shape_cast %24 : vector<1x8x32xf32> to vector<8x32xf32>
      %c0_11 = arith.constant 0 : index
      %c0_12 = arith.constant 0 : index
      %c0_13 = arith.constant 0 : index
      %26 = vector.load %arg5[%c0_11, %c0_12, %c0_13] : memref<1x8x128xf32, #tpu.memory_space<vmem>>, vector<1x8x32xf32>
      %27 = vector.shape_cast %26 : vector<1x8x32xf32> to vector<8x32xf32>
      %cst_14 = arith.constant dense<0.000000e+00> : vector<8x8xf32>
      %28 = tpu.matmul %23, %25, %cst_14 {dimension_numbers = #tpu.dot_dimension_numbers<[1], [1], [0], [0], [0, 0, 1, 0], [], []>} : vector<8x32xf32>, vector<8x32xf32>, vector<8x8xf32> -> vector<8x8xf32>
      %cst_15 = arith.constant 0xFF800000 : f32
      %29 = vector.broadcast %cst_15 : f32 to vector<8x8xf32>
      %30 = arith.select %19, %29, %28 : vector<8x8xi1>, vector<8x8xf32>
      %c0_16 = arith.constant 0 : index
      %c0_17 = arith.constant 0 : index
      %c0_18 = arith.constant 0 : index
      %31 = vector.load %arg7[%c0_16, %c0_17, %c0_18] : memref<4x8x1xf32, #tpu.memory_space<vmem>>, vector<1x8x1xf32>
      %32 = vector.shape_cast %31 : vector<1x8x1xf32> to vector<8x1xf32>
      %cst_19 = arith.constant dense<0xFF800000> : vector<8xf32>
      %33 = vector.multi_reduction <maximumf>, %30, %cst_19 [1] : vector<8x8xf32> to vector<8xf32>
      %34 = vector.shape_cast %33 : vector<8xf32> to vector<8x1xf32>
      %35 = arith.maximumf %32, %34 : vector<8x1xf32>
      %36 = arith.subf %32, %35 : vector<8x1xf32>
      %37 = math.exp %36 : vector<8x1xf32>
      %38 = vector.broadcast %35 : vector<8x1xf32> to vector<8x8xf32>
      %39 = arith.subf %30, %38 : vector<8x8xf32>
      %40 = math.exp %39 : vector<8x8xf32>
      %c0_20 = arith.constant 0 : index
      %c0_21 = arith.constant 0 : index
      %c0_22 = arith.constant 0 : index
      %41 = vector.load %arg8[%c0_20, %c0_21, %c0_22] : memref<4x8x1xf32, #tpu.memory_space<vmem>>, vector<1x8x1xf32>
      %42 = vector.shape_cast %41 : vector<1x8x1xf32> to vector<8x1xf32>
      %43 = arith.mulf %37, %42 : vector<8x1xf32>
      %cst_23 = arith.constant dense<0.000000e+00> : vector<8xf32>
      %44 = vector.multi_reduction <add>, %40, %cst_23 [1] : vector<8x8xf32> to vector<8xf32>
      %45 = vector.shape_cast %44 : vector<8xf32> to vector<8x1xf32>
      %46 = arith.addf %43, %45 : vector<8x1xf32>
      %c0_24 = arith.constant 0 : index
      %c0_25 = arith.constant 0 : index
      %c0_26 = arith.constant 0 : index
      %47 = vector.load %arg8[%c0_24, %c0_25, %c0_26] : memref<4x8x1xf32, #tpu.memory_space<vmem>>, vector<1x8x1xf32>
      %48 = vector.shape_cast %47 : vector<1x8x1xf32> to vector<8x1xf32>
      %49 = vector.shape_cast %46 : vector<8x1xf32> to vector<1x8x1xf32>
      tpu.vector_store %arg8[%c0_24, %c0_25, %c0_26], %49 {strides = array<i32>} : memref<4x8x1xf32, #tpu.memory_space<vmem>>, vector<1x8x1xf32>,
      %c0_27 = arith.constant 0 : index
      %c0_28 = arith.constant 0 : index
      %c0_29 = arith.constant 0 : index
      %50 = vector.load %arg9[%c0_27, %c0_28, %c0_29] : memref<4x8x32xf32, #tpu.memory_space<vmem>>, vector<1x8x32xf32>
      %51 = vector.shape_cast %50 : vector<1x8x32xf32> to vector<8x32xf32>
      %52 = vector.broadcast %37 : vector<8x1xf32> to vector<8x32xf32>
      %53 = arith.mulf %52, %51 : vector<8x32xf32>
      %cst_30 = arith.constant dense<0.000000e+00> : vector<8x32xf32>
      %54 = tpu.matmul %40, %27, %cst_30 {dimension_numbers = #tpu.dot_dimension_numbers<[1], [0], [0], [1], [0, 0, 1, 1], [], []>} : vector<8x8xf32>, vector<8x32xf32>, vector<8x32xf32> -> vector<8x32xf32>
      %55 = arith.addf %53, %54 : vector<8x32xf32>
      %c0_31 = arith.constant 0 : index
      %c0_32 = arith.constant 0 : index
      %c0_33 = arith.constant 0 : index
      %56 = vector.load %arg9[%c0_31, %c0_32, %c0_33] : memref<4x8x32xf32, #tpu.memory_space<vmem>>, vector<1x8x32xf32>
      %57 = vector.shape_cast %56 : vector<1x8x32xf32> to vector<8x32xf32>
      %58 = vector.shape_cast %55 : vector<8x32xf32> to vector<1x8x32xf32>
      tpu.vector_store %arg9[%c0_31, %c0_32, %c0_33], %58 {strides = array<i32>} : memref<4x8x32xf32, #tpu.memory_space<vmem>>, vector<1x8x32xf32>,
      %c0_34 = arith.constant 0 : index
      %c0_35 = arith.constant 0 : index
      %c0_36 = arith.constant 0 : index
      %59 = vector.load %arg7[%c0_34, %c0_35, %c0_36] : memref<4x8x1xf32, #tpu.memory_space<vmem>>, vector<1x8x1xf32>
      %60 = vector.shape_cast %59 : vector<1x8x1xf32> to vector<8x1xf32>
      %61 = vector.shape_cast %35 : vector<8x1xf32> to vector<1x8x1xf32>
      tpu.vector_store %arg7[%c0_34, %c0_35, %c0_36], %61 {strides = array<i32>} : memref<4x8x1xf32, #tpu.memory_space<vmem>>, vector<1x8x1xf32>,
      %c0_37 = arith.constant 0 : index
      %c0_38 = arith.constant 0 : index
      %c32 = arith.constant 32 : index
      %62 = vector.load %arg3[%c0_37, %c0_38, %c32] : memref<1x8x128xf32, #tpu.memory_space<vmem>>, vector<1x8x32xf32>
      %63 = vector.shape_cast %62 : vector<1x8x32xf32> to vector<8x32xf32>
      %cst_39 = arith.constant 0.176776692 : f32
      %64 = vector.broadcast %cst_39 : f32 to vector<8x32xf32>
      %65 = arith.mulf %63, %64 : vector<8x32xf32>
      %c0_40 = arith.constant 0 : index
      %c0_41 = arith.constant 0 : index
      %c32_42 = arith.constant 32 : index
      %66 = vector.load %arg4[%c0_40, %c0_41, %c32_42] : memref<1x8x128xf32, #tpu.memory_space<vmem>>, vector<1x8x32xf32>
      %67 = vector.shape_cast %66 : vector<1x8x32xf32> to vector<8x32xf32>
      %c0_43 = arith.constant 0 : index
      %c0_44 = arith.constant 0 : index
      %c32_45 = arith.constant 32 : index
      %68 = vector.load %arg5[%c0_43, %c0_44, %c32_45] : memref<1x8x128xf32, #tpu.memory_space<vmem>>, vector<1x8x32xf32>
      %69 = vector.shape_cast %68 : vector<1x8x32xf32> to vector<8x32xf32>
      %cst_46 = arith.constant dense<0.000000e+00> : vector<8x8xf32>
      %70 = tpu.matmul %65, %67, %cst_46 {dimension_numbers = #tpu.dot_dimension_numbers<[1], [1], [0], [0], [0, 0, 1, 0], [], []>} : vector<8x32xf32>, vector<8x32xf32>, vector<8x8xf32> -> vector<8x8xf32>
      %cst_47 = arith.constant 0xFF800000 : f32
      %71 = vector.broadcast %cst_47 : f32 to vector<8x8xf32>
      %72 = arith.select %19, %71, %70 : vector<8x8xi1>, vector<8x8xf32>
      %c1 = arith.constant 1 : index
      %c0_48 = arith.constant 0 : index
      %c0_49 = arith.constant 0 : index
      %73 = vector.load %arg7[%c1, %c0_48, %c0_49] : memref<4x8x1xf32, #tpu.memory_space<vmem>>, vector<1x8x1xf32>
      %74 = vector.shape_cast %73 : vector<1x8x1xf32> to vector<8x1xf32>
      %cst_50 = arith.constant dense<0xFF800000> : vector<8xf32>
      %75 = vector.multi_reduction <maximumf>, %72, %cst_50 [1] : vector<8x8xf32> to vector<8xf32>
      %76 = vector.shape_cast %75 : vector<8xf32> to vector<8x1xf32>
      %77 = arith.maximumf %74, %76 : vector<8x1xf32>
      %78 = arith.subf %74, %77 : vector<8x1xf32>
      %79 = math.exp %78 : vector<8x1xf32>
      %80 = vector.broadcast %77 : vector<8x1xf32> to vector<8x8xf32>
      %81 = arith.subf %72, %80 : vector<8x8xf32>
      %82 = math.exp %81 : vector<8x8xf32>
      %c1_51 = arith.constant 1 : index
      %c0_52 = arith.constant 0 : index
      %c0_53 = arith.constant 0 : index
      %83 = vector.load %arg8[%c1_51, %c0_52, %c0_53] : memref<4x8x1xf32, #tpu.memory_space<vmem>>, vector<1x8x1xf32>
      %84 = vector.shape_cast %83 : vector<1x8x1xf32> to vector<8x1xf32>
      %85 = arith.mulf %79, %84 : vector<8x1xf32>
      %cst_54 = arith.constant dense<0.000000e+00> : vector<8xf32>
      %86 = vector.multi_reduction <add>, %82, %cst_54 [1] : vector<8x8xf32> to vector<8xf32>
      %87 = vector.shape_cast %86 : vector<8xf32> to vector<8x1xf32>
      %88 = arith.addf %85, %87 : vector<8x1xf32>
      %c1_55 = arith.constant 1 : index
      %c0_56 = arith.constant 0 : index
      %c0_57 = arith.constant 0 : index
      %89 = vector.load %arg8[%c1_55, %c0_56, %c0_57] : memref<4x8x1xf32, #tpu.memory_space<vmem>>, vector<1x8x1xf32>
      %90 = vector.shape_cast %89 : vector<1x8x1xf32> to vector<8x1xf32>
      %91 = vector.shape_cast %88 : vector<8x1xf32> to vector<1x8x1xf32>
      tpu.vector_store %arg8[%c1_55, %c0_56, %c0_57], %91 {strides = array<i32>} : memref<4x8x1xf32, #tpu.memory_space<vmem>>, vector<1x8x1xf32>,
      %c1_58 = arith.constant 1 : index
      %c0_59 = arith.constant 0 : index
      %c0_60 = arith.constant 0 : index
      %92 = vector.load %arg9[%c1_58, %c0_59, %c0_60] : memref<4x8x32xf32, #tpu.memory_space<vmem>>, vector<1x8x32xf32>
      %93 = vector.shape_cast %92 : vector<1x8x32xf32> to vector<8x32xf32>
      %94 = vector.broadcast %79 : vector<8x1xf32> to vector<8x32xf32>
      %95 = arith.mulf %94, %93 : vector<8x32xf32>
      %cst_61 = arith.constant dense<0.000000e+00> : vector<8x32xf32>
      %96 = tpu.matmul %82, %69, %cst_61 {dimension_numbers = #tpu.dot_dimension_numbers<[1], [0], [0], [1], [0, 0, 1, 1], [], []>} : vector<8x8xf32>, vector<8x32xf32>, vector<8x32xf32> -> vector<8x32xf32>
      %97 = arith.addf %95, %96 : vector<8x32xf32>
      %c1_62 = arith.constant 1 : index
      %c0_63 = arith.constant 0 : index
      %c0_64 = arith.constant 0 : index
      %98 = vector.load %arg9[%c1_62, %c0_63, %c0_64] : memref<4x8x32xf32, #tpu.memory_space<vmem>>, vector<1x8x32xf32>
      %99 = vector.shape_cast %98 : vector<1x8x32xf32> to vector<8x32xf32>
      %100 = vector.shape_cast %97 : vector<8x32xf32> to vector<1x8x32xf32>
      tpu.vector_store %arg9[%c1_62, %c0_63, %c0_64], %100 {strides = array<i32>} : memref<4x8x32xf32, #tpu.memory_space<vmem>>, vector<1x8x32xf32>,
      %c1_65 = arith.constant 1 : index
      %c0_66 = arith.constant 0 : index
      %c0_67 = arith.constant 0 : index
      %101 = vector.load %arg7[%c1_65, %c0_66, %c0_67] : memref<4x8x1xf32, #tpu.memory_space<vmem>>, vector<1x8x1xf32>
      %102 = vector.shape_cast %101 : vector<1x8x1xf32> to vector<8x1xf32>
      %103 = vector.shape_cast %77 : vector<8x1xf32> to vector<1x8x1xf32>
      tpu.vector_store %arg7[%c1_65, %c0_66, %c0_67], %103 {strides = array<i32>} : memref<4x8x1xf32, #tpu.memory_space<vmem>>, vector<1x8x1xf32>,
      %c0_68 = arith.constant 0 : index
      %c0_69 = arith.constant 0 : index
      %c64 = arith.constant 64 : index
      %104 = vector.load %arg3[%c0_68, %c0_69, %c64] : memref<1x8x128xf32, #tpu.memory_space<vmem>>, vector<1x8x32xf32>
      %105 = vector.shape_cast %104 : vector<1x8x32xf32> to vector<8x32xf32>
      %cst_70 = arith.constant 0.176776692 : f32
      %106 = vector.broadcast %cst_70 : f32 to vector<8x32xf32>
      %107 = arith.mulf %105, %106 : vector<8x32xf32>
      %c0_71 = arith.constant 0 : index
      %c0_72 = arith.constant 0 : index
      %c64_73 = arith.constant 64 : index
      %108 = vector.load %arg4[%c0_71, %c0_72, %c64_73] : memref<1x8x128xf32, #tpu.memory_space<vmem>>, vector<1x8x32xf32>
      %109 = vector.shape_cast %108 : vector<1x8x32xf32> to vector<8x32xf32>
      %c0_74 = arith.constant 0 : index
      %c0_75 = arith.constant 0 : index
      %c64_76 = arith.constant 64 : index
      %110 = vector.load %arg5[%c0_74, %c0_75, %c64_76] : memref<1x8x128xf32, #tpu.memory_space<vmem>>, vector<1x8x32xf32>
      %111 = vector.shape_cast %110 : vector<1x8x32xf32> to vector<8x32xf32>
      %cst_77 = arith.constant dense<0.000000e+00> : vector<8x8xf32>
      %112 = tpu.matmul %107, %109, %cst_77 {dimension_numbers = #tpu.dot_dimension_numbers<[1], [1], [0], [0], [0, 0, 1, 0], [], []>} : vector<8x32xf32>, vector<8x32xf32>, vector<8x8xf32> -> vector<8x8xf32>
      %cst_78 = arith.constant 0xFF800000 : f32
      %113 = vector.broadcast %cst_78 : f32 to vector<8x8xf32>
      %114 = arith.select %19, %113, %112 : vector<8x8xi1>, vector<8x8xf32>
      %c2 = arith.constant 2 : index
      %c0_79 = arith.constant 0 : index
      %c0_80 = arith.constant 0 : index
      %115 = vector.load %arg7[%c2, %c0_79, %c0_80] : memref<4x8x1xf32, #tpu.memory_space<vmem>>, vector<1x8x1xf32>
      %116 = vector.shape_cast %115 : vector<1x8x1xf32> to vector<8x1xf32>
      %cst_81 = arith.constant dense<0xFF800000> : vector<8xf32>
      %117 = vector.multi_reduction <maximumf>, %114, %cst_81 [1] : vector<8x8xf32> to vector<8xf32>
      %118 = vector.shape_cast %117 : vector<8xf32> to vector<8x1xf32>
      %119 = arith.maximumf %116, %118 : vector<8x1xf32>
      %120 = arith.subf %116, %119 : vector<8x1xf32>
      %121 = math.exp %120 : vector<8x1xf32>
      %122 = vector.broadcast %119 : vector<8x1xf32> to vector<8x8xf32>
      %123 = arith.subf %114, %122 : vector<8x8xf32>
      %124 = math.exp %123 : vector<8x8xf32>
      %c2_82 = arith.constant 2 : index
      %c0_83 = arith.constant 0 : index
      %c0_84 = arith.constant 0 : index
      %125 = vector.load %arg8[%c2_82, %c0_83, %c0_84] : memref<4x8x1xf32, #tpu.memory_space<vmem>>, vector<1x8x1xf32>
      %126 = vector.shape_cast %125 : vector<1x8x1xf32> to vector<8x1xf32>
      %127 = arith.mulf %121, %126 : vector<8x1xf32>
      %cst_85 = arith.constant dense<0.000000e+00> : vector<8xf32>
      %128 = vector.multi_reduction <add>, %124, %cst_85 [1] : vector<8x8xf32> to vector<8xf32>
      %129 = vector.shape_cast %128 : vector<8xf32> to vector<8x1xf32>
      %130 = arith.addf %127, %129 : vector<8x1xf32>
      %c2_86 = arith.constant 2 : index
      %c0_87 = arith.constant 0 : index
      %c0_88 = arith.constant 0 : index
      %131 = vector.load %arg8[%c2_86, %c0_87, %c0_88] : memref<4x8x1xf32, #tpu.memory_space<vmem>>, vector<1x8x1xf32>
      %132 = vector.shape_cast %131 : vector<1x8x1xf32> to vector<8x1xf32>
      %133 = vector.shape_cast %130 : vector<8x1xf32> to vector<1x8x1xf32>
      tpu.vector_store %arg8[%c2_86, %c0_87, %c0_88], %133 {strides = array<i32>} : memref<4x8x1xf32, #tpu.memory_space<vmem>>, vector<1x8x1xf32>,
      %c2_89 = arith.constant 2 : index
      %c0_90 = arith.constant 0 : index
      %c0_91 = arith.constant 0 : index
      %134 = vector.load %arg9[%c2_89, %c0_90, %c0_91] : memref<4x8x32xf32, #tpu.memory_space<vmem>>, vector<1x8x32xf32>
      %135 = vector.shape_cast %134 : vector<1x8x32xf32> to vector<8x32xf32>
      %136 = vector.broadcast %121 : vector<8x1xf32> to vector<8x32xf32>
      %137 = arith.mulf %136, %135 : vector<8x32xf32>
      %cst_92 = arith.constant dense<0.000000e+00> : vector<8x32xf32>
      %138 = tpu.matmul %124, %111, %cst_92 {dimension_numbers = #tpu.dot_dimension_numbers<[1], [0], [0], [1], [0, 0, 1, 1], [], []>} : vector<8x8xf32>, vector<8x32xf32>, vector<8x32xf32> -> vector<8x32xf32>
      %139 = arith.addf %137, %138 : vector<8x32xf32>
      %c2_93 = arith.constant 2 : index
      %c0_94 = arith.constant 0 : index
      %c0_95 = arith.constant 0 : index
      %140 = vector.load %arg9[%c2_93, %c0_94, %c0_95] : memref<4x8x32xf32, #tpu.memory_space<vmem>>, vector<1x8x32xf32>
      %141 = vector.shape_cast %140 : vector<1x8x32xf32> to vector<8x32xf32>
      %142 = vector.shape_cast %139 : vector<8x32xf32> to vector<1x8x32xf32>
      tpu.vector_store %arg9[%c2_93, %c0_94, %c0_95], %142 {strides = array<i32>} : memref<4x8x32xf32, #tpu.memory_space<vmem>>, vector<1x8x32xf32>,
      %c2_96 = arith.constant 2 : index
      %c0_97 = arith.constant 0 : index
      %c0_98 = arith.constant 0 : index
      %143 = vector.load %arg7[%c2_96, %c0_97, %c0_98] : memref<4x8x1xf32, #tpu.memory_space<vmem>>, vector<1x8x1xf32>
      %144 = vector.shape_cast %143 : vector<1x8x1xf32> to vector<8x1xf32>
      %145 = vector.shape_cast %119 : vector<8x1xf32> to vector<1x8x1xf32>
      tpu.vector_store %arg7[%c2_96, %c0_97, %c0_98], %145 {strides = array<i32>} : memref<4x8x1xf32, #tpu.memory_space<vmem>>, vector<1x8x1xf32>,
      %c0_99 = arith.constant 0 : index
      %c0_100 = arith.constant 0 : index
      %c96 = arith.constant 96 : index
      %146 = vector.load %arg3[%c0_99, %c0_100, %c96] : memref<1x8x128xf32, #tpu.memory_space<vmem>>, vector<1x8x32xf32>
      %147 = vector.shape_cast %146 : vector<1x8x32xf32> to vector<8x32xf32>
      %cst_101 = arith.constant 0.176776692 : f32
      %148 = vector.broadcast %cst_101 : f32 to vector<8x32xf32>
      %149 = arith.mulf %147, %148 : vector<8x32xf32>
      %c0_102 = arith.constant 0 : index
      %c0_103 = arith.constant 0 : index
      %c96_104 = arith.constant 96 : index
      %150 = vector.load %arg4[%c0_102, %c0_103, %c96_104] : memref<1x8x128xf32, #tpu.memory_space<vmem>>, vector<1x8x32xf32>
      %151 = vector.shape_cast %150 : vector<1x8x32xf32> to vector<8x32xf32>
      %c0_105 = arith.constant 0 : index
      %c0_106 = arith.constant 0 : index
      %c96_107 = arith.constant 96 : index
      %152 = vector.load %arg5[%c0_105, %c0_106, %c96_107] : memref<1x8x128xf32, #tpu.memory_space<vmem>>, vector<1x8x32xf32>
      %153 = vector.shape_cast %152 : vector<1x8x32xf32> to vector<8x32xf32>
      %cst_108 = arith.constant dense<0.000000e+00> : vector<8x8xf32>
      %154 = tpu.matmul %149, %151, %cst_108 {dimension_numbers = #tpu.dot_dimension_numbers<[1], [1], [0], [0], [0, 0, 1, 0], [], []>} : vector<8x32xf32>, vector<8x32xf32>, vector<8x8xf32> -> vector<8x8xf32>
      %cst_109 = arith.constant 0xFF800000 : f32
      %155 = vector.broadcast %cst_109 : f32 to vector<8x8xf32>
      %156 = arith.select %19, %155, %154 : vector<8x8xi1>, vector<8x8xf32>
      %c3 = arith.constant 3 : index
      %c0_110 = arith.constant 0 : index
      %c0_111 = arith.constant 0 : index
      %157 = vector.load %arg7[%c3, %c0_110, %c0_111] : memref<4x8x1xf32, #tpu.memory_space<vmem>>, vector<1x8x1xf32>
      %158 = vector.shape_cast %157 : vector<1x8x1xf32> to vector<8x1xf32>
      %cst_112 = arith.constant dense<0xFF800000> : vector<8xf32>
      %159 = vector.multi_reduction <maximumf>, %156, %cst_112 [1] : vector<8x8xf32> to vector<8xf32>
      %160 = vector.shape_cast %159 : vector<8xf32> to vector<8x1xf32>
      %161 = arith.maximumf %158, %160 : vector<8x1xf32>
      %162 = arith.subf %158, %161 : vector<8x1xf32>
      %163 = math.exp %162 : vector<8x1xf32>
      %164 = vector.broadcast %161 : vector<8x1xf32> to vector<8x8xf32>
      %165 = arith.subf %156, %164 : vector<8x8xf32>
      %166 = math.exp %165 : vector<8x8xf32>
      %c3_113 = arith.constant 3 : index
      %c0_114 = arith.constant 0 : index
      %c0_115 = arith.constant 0 : index
      %167 = vector.load %arg8[%c3_113, %c0_114, %c0_115] : memref<4x8x1xf32, #tpu.memory_space<vmem>>, vector<1x8x1xf32>
      %168 = vector.shape_cast %167 : vector<1x8x1xf32> to vector<8x1xf32>
      %169 = arith.mulf %163, %168 : vector<8x1xf32>
      %cst_116 = arith.constant dense<0.000000e+00> : vector<8xf32>
      %170 = vector.multi_reduction <add>, %166, %cst_116 [1] : vector<8x8xf32> to vector<8xf32>
      %171 = vector.shape_cast %170 : vector<8xf32> to vector<8x1xf32>
      %172 = arith.addf %169, %171 : vector<8x1xf32>
      %c3_117 = arith.constant 3 : index
      %c0_118 = arith.constant 0 : index
      %c0_119 = arith.constant 0 : index
      %173 = vector.load %arg8[%c3_117, %c0_118, %c0_119] : memref<4x8x1xf32, #tpu.memory_space<vmem>>, vector<1x8x1xf32>
      %174 = vector.shape_cast %173 : vector<1x8x1xf32> to vector<8x1xf32>
      %175 = vector.shape_cast %172 : vector<8x1xf32> to vector<1x8x1xf32>
      tpu.vector_store %arg8[%c3_117, %c0_118, %c0_119], %175 {strides = array<i32>} : memref<4x8x1xf32, #tpu.memory_space<vmem>>, vector<1x8x1xf32>,
      %c3_120 = arith.constant 3 : index
      %c0_121 = arith.constant 0 : index
      %c0_122 = arith.constant 0 : index
      %176 = vector.load %arg9[%c3_120, %c0_121, %c0_122] : memref<4x8x32xf32, #tpu.memory_space<vmem>>, vector<1x8x32xf32>
      %177 = vector.shape_cast %176 : vector<1x8x32xf32> to vector<8x32xf32>
      %178 = vector.broadcast %163 : vector<8x1xf32> to vector<8x32xf32>
      %179 = arith.mulf %178, %177 : vector<8x32xf32>
      %cst_123 = arith.constant dense<0.000000e+00> : vector<8x32xf32>
      %180 = tpu.matmul %166, %153, %cst_123 {dimension_numbers = #tpu.dot_dimension_numbers<[1], [0], [0], [1], [0, 0, 1, 1], [], []>} : vector<8x8xf32>, vector<8x32xf32>, vector<8x32xf32> -> vector<8x32xf32>
      %181 = arith.addf %179, %180 : vector<8x32xf32>
      %c3_124 = arith.constant 3 : index
      %c0_125 = arith.constant 0 : index
      %c0_126 = arith.constant 0 : index
      %182 = vector.load %arg9[%c3_124, %c0_125, %c0_126] : memref<4x8x32xf32, #tpu.memory_space<vmem>>, vector<1x8x32xf32>
      %183 = vector.shape_cast %182 : vector<1x8x32xf32> to vector<8x32xf32>
      %184 = vector.shape_cast %181 : vector<8x32xf32> to vector<1x8x32xf32>
      tpu.vector_store %arg9[%c3_124, %c0_125, %c0_126], %184 {strides = array<i32>} : memref<4x8x32xf32, #tpu.memory_space<vmem>>, vector<1x8x32xf32>,
      %c3_127 = arith.constant 3 : index
      %c0_128 = arith.constant 0 : index
      %c0_129 = arith.constant 0 : index
      %185 = vector.load %arg7[%c3_127, %c0_128, %c0_129] : memref<4x8x1xf32, #tpu.memory_space<vmem>>, vector<1x8x1xf32>
      %186 = vector.shape_cast %185 : vector<1x8x1xf32> to vector<8x1xf32>
      %187 = vector.shape_cast %161 : vector<8x1xf32> to vector<1x8x1xf32>
      tpu.vector_store %arg7[%c3_127, %c0_128, %c0_129], %187 {strides = array<i32>} : memref<4x8x1xf32, #tpu.memory_space<vmem>>, vector<1x8x1xf32>,
    } else {
    }
    %c0_i32_4 = arith.constant 0 : i32
    %10 = arith.cmpi eq, %arg2, %c0_i32_4 : i32
    %11 = arith.extui %10 : i1 to i32
    %c0_i32_5 = arith.constant 0 : i32
    %12 = arith.cmpi ne, %11, %c0_i32_5 : i32
    scf.if %12 {
      %c0 = arith.constant 0 : index
      %c0_6 = arith.constant 0 : index
      %c0_7 = arith.constant 0 : index
      %13 = vector.load %arg8[%c0, %c0_6, %c0_7] : memref<4x8x1xf32, #tpu.memory_space<vmem>>, vector<1x8x1xf32>
      %14 = vector.shape_cast %13 : vector<1x8x1xf32> to vector<8x1xf32>
      %15 = tpu.reciprocal %14 {approx = true} : vector<8x1xf32> -> vector<8x1xf32>
      %c0_8 = arith.constant 0 : index
      %c0_9 = arith.constant 0 : index
      %c0_10 = arith.constant 0 : index
      %16 = vector.load %arg9[%c0_8, %c0_9, %c0_10] : memref<4x8x32xf32, #tpu.memory_space<vmem>>, vector<1x8x32xf32>
      %17 = vector.shape_cast %16 : vector<1x8x32xf32> to vector<8x32xf32>
      %18 = vector.broadcast %15 : vector<8x1xf32> to vector<8x32xf32>
      %19 = arith.mulf %17, %18 : vector<8x32xf32>
      %c0_11 = arith.constant 0 : index
      %c0_12 = arith.constant 0 : index
      %c0_13 = arith.constant 0 : index
      %20 = vector.load %arg6[%c0_11, %c0_12, %c0_13] : memref<1x8x128xf32, #tpu.memory_space<vmem>>, vector<1x8x32xf32>
      %21 = vector.shape_cast %20 : vector<1x8x32xf32> to vector<8x32xf32>
      %22 = vector.shape_cast %19 : vector<8x32xf32> to vector<1x8x32xf32>
      tpu.vector_store %arg6[%c0_11, %c0_12, %c0_13], %22 {strides = array<i32>} : memref<1x8x128xf32, #tpu.memory_space<vmem>>, vector<1x8x32xf32>,
      %c1 = arith.constant 1 : index
      %c0_14 = arith.constant 0 : index
      %c0_15 = arith.constant 0 : index
      %23 = vector.load %arg8[%c1, %c0_14, %c0_15] : memref<4x8x1xf32, #tpu.memory_space<vmem>>, vector<1x8x1xf32>
      %24 = vector.shape_cast %23 : vector<1x8x1xf32> to vector<8x1xf32>
      %25 = tpu.reciprocal %24 {approx = true} : vector<8x1xf32> -> vector<8x1xf32>
      %c1_16 = arith.constant 1 : index
      %c0_17 = arith.constant 0 : index
      %c0_18 = arith.constant 0 : index
      %26 = vector.load %arg9[%c1_16, %c0_17, %c0_18] : memref<4x8x32xf32, #tpu.memory_space<vmem>>, vector<1x8x32xf32>
      %27 = vector.shape_cast %26 : vector<1x8x32xf32> to vector<8x32xf32>
      %28 = vector.broadcast %25 : vector<8x1xf32> to vector<8x32xf32>
      %29 = arith.mulf %27, %28 : vector<8x32xf32>
      %c0_19 = arith.constant 0 : index
      %c0_20 = arith.constant 0 : index
      %c32 = arith.constant 32 : index
      %30 = vector.load %arg6[%c0_19, %c0_20, %c32] : memref<1x8x128xf32, #tpu.memory_space<vmem>>, vector<1x8x32xf32>
      %31 = vector.shape_cast %30 : vector<1x8x32xf32> to vector<8x32xf32>
      %32 = vector.shape_cast %29 : vector<8x32xf32> to vector<1x8x32xf32>
      tpu.vector_store %arg6[%c0_19, %c0_20, %c32], %32 {strides = array<i32>} : memref<1x8x128xf32, #tpu.memory_space<vmem>>, vector<1x8x32xf32>,
      %c2 = arith.constant 2 : index
      %c0_21 = arith.constant 0 : index
      %c0_22 = arith.constant 0 : index
      %33 = vector.load %arg8[%c2, %c0_21, %c0_22] : memref<4x8x1xf32, #tpu.memory_space<vmem>>, vector<1x8x1xf32>
      %34 = vector.shape_cast %33 : vector<1x8x1xf32> to vector<8x1xf32>
      %35 = tpu.reciprocal %34 {approx = true} : vector<8x1xf32> -> vector<8x1xf32>
      %c2_23 = arith.constant 2 : index
      %c0_24 = arith.constant 0 : index
      %c0_25 = arith.constant 0 : index
      %36 = vector.load %arg9[%c2_23, %c0_24, %c0_25] : memref<4x8x32xf32, #tpu.memory_space<vmem>>, vector<1x8x32xf32>
      %37 = vector.shape_cast %36 : vector<1x8x32xf32> to vector<8x32xf32>
      %38 = vector.broadcast %35 : vector<8x1xf32> to vector<8x32xf32>
      %39 = arith.mulf %37, %38 : vector<8x32xf32>
      %c0_26 = arith.constant 0 : index
      %c0_27 = arith.constant 0 : index
      %c64 = arith.constant 64 : index
      %40 = vector.load %arg6[%c0_26, %c0_27, %c64] : memref<1x8x128xf32, #tpu.memory_space<vmem>>, vector<1x8x32xf32>
      %41 = vector.shape_cast %40 : vector<1x8x32xf32> to vector<8x32xf32>
      %42 = vector.shape_cast %39 : vector<8x32xf32> to vector<1x8x32xf32>
      tpu.vector_store %arg6[%c0_26, %c0_27, %c64], %42 {strides = array<i32>} : memref<1x8x128xf32, #tpu.memory_space<vmem>>, vector<1x8x32xf32>,
      %c3 = arith.constant 3 : index
      %c0_28 = arith.constant 0 : index
      %c0_29 = arith.constant 0 : index
      %43 = vector.load %arg8[%c3, %c0_28, %c0_29] : memref<4x8x1xf32, #tpu.memory_space<vmem>>, vector<1x8x1xf32>
      %44 = vector.shape_cast %43 : vector<1x8x1xf32> to vector<8x1xf32>
      %45 = tpu.reciprocal %44 {approx = true} : vector<8x1xf32> -> vector<8x1xf32>
      %c3_30 = arith.constant 3 : index
      %c0_31 = arith.constant 0 : index
      %c0_32 = arith.constant 0 : index
      %46 = vector.load %arg9[%c3_30, %c0_31, %c0_32] : memref<4x8x32xf32, #tpu.memory_space<vmem>>, vector<1x8x32xf32>
      %47 = vector.shape_cast %46 : vector<1x8x32xf32> to vector<8x32xf32>
      %48 = vector.broadcast %45 : vector<8x1xf32> to vector<8x32xf32>
      %49 = arith.mulf %47, %48 : vector<8x32xf32>
      %c0_33 = arith.constant 0 : index
      %c0_34 = arith.constant 0 : index
      %c96 = arith.constant 96 : index
      %50 = vector.load %arg6[%c0_33, %c0_34, %c96] : memref<1x8x128xf32, #tpu.memory_space<vmem>>, vector<1x8x32xf32>
      %51 = vector.shape_cast %50 : vector<1x8x32xf32> to vector<8x32xf32>
      %52 = vector.shape_cast %49 : vector<8x32xf32> to vector<1x8x32xf32>
      tpu.vector_store %arg6[%c0_33, %c0_34, %c96], %52 {strides = array<i32>} : memref<1x8x128xf32, #tpu.memory_space<vmem>>, vector<1x8x32xf32>,
    } else {
    }
    return
  }
  func.func @transform_0(%arg0: i32, %arg1: i32, %arg2: i32) -> (i32, i32, i32) {
    %c0_i32 = arith.constant 0 : i32
    %c0_i32_0 = arith.constant 0 : i32
    return %arg0, %arg1, %c0_i32 : i32, i32, i32
  }
  func.func @transform_1(%arg0: i32, %arg1: i32, %arg2: i32) -> (i32, i32, i32) {
    %c0_i32 = arith.constant 0 : i32
    %c0_i32_0 = arith.constant 0 : i32
    return %arg0, %arg2, %c0_i32 : i32, i32, i32
  }
  func.func @transform_2(%arg0: i32, %arg1: i32, %arg2: i32) -> (i32, i32, i32) {
    %c0_i32 = arith.constant 0 : i32
    %c0_i32_0 = arith.constant 0 : i32
    return %arg0, %arg2, %c0_i32 : i32, i32, i32
  }
  func.func @transform_3(%arg0: i32, %arg1: i32, %arg2: i32) -> (i32, i32, i32) {
    %c0_i32 = arith.constant 0 : i32
    %c0_i32_0 = arith.constant 0 : i32
    return %arg0, %arg1, %c0_i32 : i32, i32, i32
  }
}

</mosaic_0001>

<bundles_post_ra>
// kernel: tpu_custom_call.1
= control target key start
LH: loop header
LB: loop body
LE: loop exit
PB: predicated region body
PF: predicated region fallthrough
CT: control target
= control target key end

     0   :  { %s2032_s0 = inlined_call_operand.hbm [shape: f32[2,8,128], index: 0, kind: input, shape index: {}]   ;;  %s2033_s1 = inlined_call_operand.hbm [shape: f32[2,8,128], index: 1, kind: input, shape index: {}]   ;;  %s2034_s2 = inlined_call_operand.hbm [shape: f32[2,8,128], index: 2, kind: input, shape index: {}]   ;;  %s2035_s3 = inlined_call_operand.hbm [shape: f32[2,8,128], index: 3, kind: output, shape index: {}]  }
   0x1   :  { %2039 = sst [smem:[#allocation17_spill]] %s2033_s1 }
   0x2   :  { %8 = vsyncpa [#allocation6], 0 }
   0x3   :  { %10 = vsyncpa [#allocation6 + $0x1], 0 }
   0x4   :  { %11 = vsyncpa [#allocation9], 0 }
   0x5   :  { %13 = vsyncpa [#allocation9 + $0x1], 0 }
   0x6   :  { %14 = vsyncpa [#allocation7], 0 }
   0x7   :  { %16 = vsyncpa [#allocation7 + $0x1], 0  ;;  %s1706_s12 = smov 0   ;;  %s1708_s13 = smov 0  }
   0x8   :  { %s1710_s14 = smov 0   ;;  %s1712_s15 = smov 0  }
   0x9   :  { %s1714_s16 = smov 0   ;;  %s1716_s17 = smov 0  }
   0xa LB: > { %2040 = sst [smem:[#allocation15_spill]] %s1669_s16  ;;  %s1737_s18 = sadd.s32 4294967295, %s1673_s17   ;;  %s1673_s17 = sphi %s1716_s17, %s22_s17   ;;  %s1669_s16 = sphi %s1714_s16, %s2052_s16   ;;  %s1665_s15 = sphi %s1712_s15, %s2051_s15   ;;  %s1661_s14 = sphi %s1710_s14, %s2055_s14   ;;  %s1657_s13 = sphi %s1708_s13, %s2054_s13   ;;  %s1653_s12 = sphi %s1706_s12, %s2053_s12  }
   0xb   : > { %s1314_s19 = sadd.s32 4294967294, %s1673_s17   ;;  %s41_s20 = sadd.s32 1, %s1669_s16 }
   0xc   : > { %s50_s21 = sadd.s32 1, %s1661_s14  ;;  %p43_p0 = scmp.ge.s32.totalorder %s41_s20, 2 }
   0xd   : > { %p57_p1 = scmp.ne.s32.totalorder %s1661_s14, %s1657_s13  ;;  %p58_p2 = scmp.eq.s32.totalorder %s1673_s17, 0 }
   0xe   : > { %p63_p3 = scmp.ne.s32.totalorder %s1657_s13, %s1653_s12  ;;  %s2057_s20 = smov (%p43_p0, %s41_s20), 0 }
   0xf   : > { %2041 = sst [smem:[#allocation16_spill]] %s2057_s20  ;;  %p1749_p4 = por %p58_p2, %p57_p1 }
  0x10   : > { %p64_p5 = scmp.eq.s32.totalorder %s1737_s18, 0  ;;  %s45_s23 = ssub.s32 %s1669_s16, %s2057_s20 }
  0x11   : > { %p145_p6 = scmp.eq.s32.totalorder %s1737_s18, 1  ;;  %p48_p7 = scmp.eq.s32.totalorder %s45_s23, 0 }
  0x12   : > { %p1757_p8 = por %p64_p5, %p63_p3  ;;  %p151_p10 = scmp.eq.s32.totalorder %s1314_s19, 1 }
  0x13   : > { %p1761_p9 = por %p145_p6, %p57_p1  ;;  %p1422_p13 = scmp.lt.s32.totalorder %s1673_s17, 2 }
  0x14   : > { %s1766_s26 = scalar_select %p48_p7, %s1661_s14, %s50_s21  }
  0x15   : > { %p1768_p11 = por %p151_p10, %p63_p3  ;;  %s2036_s28 = sand.u32 1, %s1661_s14  }
  0x16   : > { %s1777_s29 = sshll.u32 %s2036_s28, 3  ;;  %s1780_s30 = sshll.u32 %s1669_s16, 7 }
  0x17   : > { %p1784_p0 = pnand %p1422_p13, %p1749_p4  ;;  %s190_s5 = sand.u32 1, %s1673_s17  }
  0x18   : > { %s2047_s1 = sld [smem:[#allocation17_spill]]  ;;  %s194_s9 = scalar_lea.vmem [#allocation8], %s1777_s29 }
  0x19   : > { %s202_s10 = sshll.u32 %s194_s9, 4  ;;  %p1323_p1 = scmp.ge.s32.totalorder %s1673_s17, 1  ;;  %s203_s10 = int_to_ptr.vmem [resolvable:$true] %s202_s10 }
  0x1a   : > { %p226_p2 = scmp.lt.s32.totalorder %s1673_s17, 3  ;;  %s1796_s11 = scalar_lea.sflag [#allocation9], %s190_s5 }
  0x1b   : > { %p1507_p3 = pneg %p1784_p0  ;;  %s1518_s19 = scalar_lea.vmem %s203_s10, 128 }
  0x1c   : > { %p1519_p4 = scmp.ne.s32.totalorder %s203_s10, %s1518_s19  ;;  %s1675_s21 = smov [#allocation8]  }
  0x1d   : > { %s1523_s22 = sshll.u32 %s1675_s21, 4  ;;  %s1524_s22 = int_to_ptr.vmem [resolvable:$false] %s1523_s22 }
  0x1e   : > { %s200_s8 = scalar_lea.hbm %s2047_s1, %s1780_s30  ;;  %p1521_p5 = pnand %p1519_p4, %p1507_p3 }
  0x1f   : > { %s1525_s23 = scalar_lea.vmem %s1524_s22, 256  ;;  %p1526_p7 = scmp.lt.s32.totalorder %s203_s10, %s1524_s22 }
  0x20   : > { %p1522_p6 = pneg %p1521_p5  ;;  %p1527_p10 = scmp.lt.s32.totalorder %s1525_s23, %s1518_s19 }
  0x22   : > { %p1528_p13 = por %p1527_p10, %p1526_p7 }
  0x24   : > { %p1529_p12 = pnand %p1528_p13, %p1522_p6 }
  0x26   : > { %1532 = shalt.err (!%p1529_p12)
}
  0x27   : > { %1414 = dma.hbm_to_vmem [thread:$0]  (!%p1784_p0), %s200_s8, 128, %s203_s10, %s1796_s11  }
  0x28   : > { %p1810_p4 = pnand %p1323_p1, %p226_p2  ;;  %s181_s9 = scalar_lea.hbm %s2032_s0, %s1780_s30 }
  0x29   : > { %s175_s19 = scalar_lea.vmem [#allocation5], %s1777_s29  ;;  %s219_s28 = scalar_lea.hbm %s2034_s2, %s1780_s30 }
  0x2a   : > { %s183_s21 = sshll.u32 %s175_s19, 4  ;;  %s2049_s1 = sand.u32 1, %s1661_s14   ;;  %s184_s21 = int_to_ptr.vmem [resolvable:$true] %s183_s21 }
  0x2b   : > { %s172_s20 = scalar_lea.sflag [#allocation6], %s2049_s1  ;;  %s1546_s8 = scalar_lea.vmem %s184_s21, 128 }
  0x2c   : > { %p1547_p12 = scmp.ne.s32.totalorder %s184_s21, %s1546_s8  ;;  %s1676_s10 = smov [#allocation5]  }
  0x2d   : > { %s1551_s16 = sshll.u32 %s1676_s10, 4  ;;  %s1552_s16 = int_to_ptr.vmem [resolvable:$false] %s1551_s16 }
  0x2e   : > { %p1549_p1 = pnand %p1547_p12, %p1507_p3  ;;  %s1553_s6 = scalar_lea.vmem %s1552_s16, 256 }
  0x2f   : > { %p1554_p5 = scmp.lt.s32.totalorder %s184_s21, %s1552_s16  ;;  %p1555_p6 = scmp.lt.s32.totalorder %s1553_s6, %s1546_s8 }
  0x30   : > { %p1550_p2 = pneg %p1549_p1 }
  0x31   : > { %p1556_p7 = por %p1555_p6, %p1554_p5 }
  0x33   : > { %p1557_p10 = pnand %p1556_p7, %p1550_p2 }
  0x35   : > { %1560 = shalt.err (!%p1557_p10)
}
  0x36   : > { %1411 = dma.hbm_to_vmem [thread:$0]  (!%p1784_p0), %s181_s9, 128, %s184_s21, %s172_s20  }
  0x37   : > { %s213_s1 = scalar_lea.vmem [#allocation10], %s1777_s29  ;;  %s1677_s22 = smov [#allocation10]  }
  0x38   : > { %s221_s7 = sshll.u32 %s213_s1, 4  ;;  %s1579_s16 = sshll.u32 %s1677_s22, 4  ;;  %s222_s7 = int_to_ptr.vmem [resolvable:$true] %s221_s7  ;;  %s1580_s16 = int_to_ptr.vmem [resolvable:$false] %s1579_s16 }
  0x39   : > { %s1574_s19 = scalar_lea.vmem %s222_s7, 128  ;;  %s1581_s23 = scalar_lea.vmem %s1580_s16, 256 }
  0x3a   : > { %p1575_p13 = scmp.ne.s32.totalorder %s222_s7, %s1574_s19  ;;  %p1582_p2 = scmp.lt.s32.totalorder %s222_s7, %s1580_s16 }
  0x3b   : > { %p1583_p5 = scmp.lt.s32.totalorder %s1581_s23, %s1574_s19 }
  0x3c   : > { %p1577_p12 = pnand %p1575_p13, %p1507_p3 }
  0x3d   : > { %p1584_p6 = por %p1583_p5, %p1582_p2 }
  0x3e   : > { %p1578_p1 = pneg %p1577_p12 }
  0x40   : > { %p1585_p7 = pnand %p1584_p6, %p1578_p1 }
  0x42   : > { %1588 = shalt.err (!%p1585_p7)
}
  0x43   : > { %1417 = dma.hbm_to_vmem [thread:$0]  (!%p1784_p0), %s219_s28, 128, %s222_s7, %s1796_s11  }
  0x44   : > { %230 = sbr.rel (%p1810_p4) target bundleno = 1466 (0x5ba), region = 32  ;;  %s1845_s9 = sand.u32 (!%p1810_p4), 1, %s1657_s13  }
  0x45   : > { %s1848_s21 = sshll.u32 (!%p1810_p4), %s1845_s9, 3  ;;  %s233_s4 = scalar_lea.sflag (!%p1810_p4), [#allocation6], %s1845_s9 }
  0x46   : > { %s236_s8 = scalar_lea.vmem (!%p1810_p4), [#allocation5], %s1848_s21 }
  0x49   : > { %1640 = dma.done.wait (%p1757_p8), %s233_s4, 128  }
  0x4a   : > { %1642 = vsyncadd (%p1757_p8), %s233_s4, 4294967168  ;;  %s241_s28 = sand.u32 1, %s1737_s18   ;;  %s245_s11 = scalar_lea.vmem [#allocation8], %s1848_s21 }
  0x4b   : > { %s242_s30 = scalar_lea.sflag [#allocation9], %s241_s28 }
  0x4c   : > { %1644 = dma.done.wait (%p1757_p8), %s242_s30, 256  }
  0x4d   : > { %1646 = vsyncadd (%p1757_p8), %s242_s30, 4294967040  ;;  %vm302_vm0 = vcmask 261120   ;;  %v1678_v0 = vmov 0.0   ;;  %vm1679_vm1 = vmmov 0   ;;  %v323_v1 = vld [vmem:[%s245_s11] sm:$0xff]  ;;  %v321_v2 = vld [vmem:[%s236_s8] sm:$0xff]  ;;  %v312_v5 = vlaneseq }
  0x4e   : > { %1360 = vmatprep.subr.mxu0 %v1678_v0  ;;  %303 = vst.msk [vmem:[#allocation4] sm:$0xff] %vm302_vm0, %v1678_v0  ;;  %304 = vst.msk [vmem:[#allocation4 + $0x8] sm:$0xff] %vm302_vm0, %v1678_v0  ;;  %1362 = vmatprep.mubr.msk.f32.mxu0 %vm1679_vm1, %v1678_v0  ;;  %v322_v3 = vmul.f32 0.17677669, %v321_v2  ;;  %vm293_vm2 = vcmask 7168   ;;  %v1680_v4 = vmov -inf  }
  0x4f   : > { %305 = vst.msk [vmem:[#allocation4 + $0x10] sm:$0xff] %vm302_vm0, %v1678_v0  ;;  %306 = vst.msk [vmem:[#allocation4 + $0x18] sm:$0xff] %vm302_vm0, %v1678_v0  ;;  %1365 = vmatprep.subr.mxu1 %v1678_v0  ;;  %1367 = vmatprep.mubr.msk.f32.mxu1 %vm1679_vm1, %v1678_v0  ;;  %v1893_v6 = vshrl.u32 %v312_v5, 7  ;;  %v1895_v7 = vand.u32 127, %v312_v5  ;;  %vm404_vm4 = vcmask 64512   ;;  %v1681_v12 = vmov 0  }
  0x50   : > { %1361 = vmatpush3.xpose.msk.msra.mxu0 %vm302_vm0, %v323_v1  ;;  %294 = vst.msk [vmem:[#allocation2] sm:$0xff] %vm293_vm2, %v1680_v4  ;;  %295 = vst.msk [vmem:[#allocation2 + $0x8] sm:$0xff] %vm293_vm2, %v1680_v4  ;;  %1479 = vset.pattern.permute.xlu0 %v1681_v12  ;;  %s1682_s18 = smov 96   ;;  %s1683_s24 = smov 64   ;;  %vm1134_vm5 = vcmask 523520   ;;  %vm1151_vm6 = vcmask 785920  }
  0x51   : > { %1375 = vmatprep.subr.mxu0 %v1678_v0  ;;  %296 = vst.msk [vmem:[#allocation2 + $0x10] sm:$0xff] %vm293_vm2, %v1680_v4  ;;  %297 = vst.msk [vmem:[#allocation2 + $0x18] sm:$0xff] %vm293_vm2, %v1680_v4  ;;  %vm320_vm3 = vcmp.gt.s32.totalorder %v1895_v7, %v1893_v6  ;;  %1480 = vset.pattern.permute.xlu1 %v1681_v12  ;;  %s1684_s5 = smov 32   ;;  %s254_s10 = scalar_lea.vmem [#allocation10], %s1848_s21  ;;  %vm1168_vm7 = vcmask 1048320  }
  0x52   : > { %298 = vst.msk [vmem:[#allocation3] sm:$0xff] %vm293_vm2, %v1678_v0  ;;  %299 = vst.msk [vmem:[#allocation3 + $0x8] sm:$0xff] %vm293_vm2, %v1678_v0  ;;  %519 = vrot.lane.b32.xlu1 %v323_v1, %s1682_s18  ;;  %v324_v17 = vld [vmem:[%s254_s10] sm:$0xff]  ;;  %s286_s6 = scalar_lea.vmem [#allocation11], %s1848_s21  ;;  %s1341_s1 = sshll.u32 %s1665_s15, 7 }
  0x53   : > { %1363 = vmatmul.mubr.msk.f32.vlgmr.msra.gmra.mxu0 %vm302_vm0, %v322_v3  ;;  %300 = vst.msk [vmem:[#allocation3 + $0x10] sm:$0xff] %vm293_vm2, %v1678_v0  ;;  %301 = vst.msk [vmem:[#allocation3 + $0x18] sm:$0xff] %vm293_vm2, %v1678_v0  ;;  %1366 = vmatpush3.msra.mxu1 %v324_v17  ;;  %s1185_s7 = sshll.u32 %s286_s6, 4  ;;  %s1990_s16 = scalar_lea.hbm %s2035_s3, %s1341_s1  ;;  %s1186_s7 = int_to_ptr.vmem [resolvable:$true] %s1185_s7 }
  0x54   : > { %1377 = vmatprep.mubr.msk.f32.mxu0 %vm1679_vm1, %v1678_v0  ;;  %1370 = vmatprep.subr.mxu1 %v1678_v0  ;;  %s1171_s23 = scalar_lea.sflag [#allocation7], %s1845_s9  ;;  %s1589_s20 = scalar_lea.vmem %s1186_s7, 128 }
  0x55   : > { %p1590_p8 = scmp.ne.s32.totalorder %s1186_s7, %s1589_s20  ;;  %s1685_s29 = smov [#allocation11]  }
  0x56   : > { %516 = vrot.lane.b32.xlu1 %v322_v3, %s1682_s18  ;;  %s1593_s21 = sshll.u32 %s1685_s29, 4  ;;  %s1594_s21 = int_to_ptr.vmem [resolvable:$false] %s1593_s21 }
  0x57   : > { %v1909_v13 = vld [vmem:[#allocation2] sm:$0xff]  ;;  %v597_v42 = vld [vmem:[#allocation2 + $0x8] sm:$0xff]  ;;  %p1591_p0 = pnand %p1590_p8, %p1761_p9  ;;  %s1595_s15 = scalar_lea.vmem %s1594_s21, 256 }
  0x58   : > { %v795_v45 = vld [vmem:[#allocation2 + $0x10] sm:$0xff]  ;;  %v993_v49 = vld [vmem:[#allocation2 + $0x18] sm:$0xff]  ;;  %p1596_p4 = scmp.lt.s32.totalorder %s1186_s7, %s1594_s21  ;;  %p1597_p10 = scmp.lt.s32.totalorder %s1595_s15, %s1589_s20 }
  0x59   : > { %p1592_p3 = pneg %p1591_p0 }
  0x5a   : > { %717 = vrot.lane.b32.xlu1 %v323_v1, %s1683_s24  ;;  %p1598_p13 = por %p1597_p10, %p1596_p4 }
  0x5c   : > { %p1599_p12 = pnand %p1598_p13, %p1592_p3 }
  0x5e   : > { %714 = vrot.lane.b32.xlu1 %v322_v3, %s1683_s24 }
  0x62   : > { %915 = vrot.lane.b32.xlu1 %v323_v1, %s1684_s5 }
  0x66   : > { %912 = vrot.lane.b32.xlu1 %v322_v3, %s1684_s5 }
  0xc4   : > { %v520_v18 = vpop.permute.xlu1 %519 }
  0xc8   : > { %v517_v22 = vpop.permute.xlu1 %516 }
  0xcc   : > { %v718_v23 = vpop.permute.xlu1 %717 }
  0xd0   : > { %v715_v24 = vpop.permute.xlu1 %714 }
  0xd4   : > { %v916_v26 = vpop.permute.xlu1 %915 }
  0xd8   : > { %v913_v27 = vpop.permute.xlu1 %912 }
 0x113   : > { %v398_v8 = vpop.f32.mrf.mxu0 }
 0x114   : > { %v402_v9 = vsel %vm320_vm3, -inf, %v398_v8 }
 0x115   : > { %v1364_v10 = vpop.f32.mrf.mxu0  ;;  %v405_v11 = vsel %vm404_vm4, %v402_v9, -inf }
 0x116   : > { %406 = vmax.xlane.f32.xlu0 %v405_v11 }
 0x19f   : > { %v407_v14 = vpop.xlane.xlu0 %406 }
 0x1a0   : > { %v1912_v15 = vmax.f32 %v1909_v13, %v407_v14 }
 0x1a2   : > { %v409_v16 = vsub.f32 %v1909_v13, %v1912_v15  ;;  %510 = vst.msk [vmem:[#allocation2] sm:$0xff] %vm293_vm2, %v1912_v15  ;;  %414 = vperm.xlu0 %1479, %v1912_v15   ;;  %v614_v15 = vld [vmem:[#allocation3 + $0x8] sm:$0xff] }
 0x1a4   : > { %v410_v12 = vmul.f32 1.442695, %v409_v16 }
 0x21d   : > { %v415_v19 = vpop.permute.xlu0 %414 }
 0x21e   : > { %v417_v20 = vsub.f32 %v402_v9, %v415_v19 }
 0x220   : > { %v418_v21 = vmul.f32 1.442695, %v417_v20  ;;  %v420_v20 = vld [vmem:[#allocation3] sm:$0xff] }
 0x222   : > { %1481 = vpow2.f32 %v418_v21 }
 0x22f   : > { %v1482_v25 = vpop.eup %1481 }
 0x230   : > { %1368 = vmatmul.mubr.msk.f32.vlgmr.msra.gmra.mxu1 %vm404_vm4, %v1482_v25  ;;  %v422_v54 = vsel %vm404_vm4, %v1482_v25, 0.0 }
 0x231   : > { %1371 = vmatpush3.xpose.msk.msra.mxu1 %vm302_vm0, %v520_v18  ;;  %1372 = vmatprep.mubr.msk.f32.mxu1 %vm1679_vm1, %v1678_v0 }
 0x232   : > { %1380 = vmatprep.subr.mxu1 %v1678_v0 }
 0x234   : > { %1373 = vmatmul.mubr.msk.f32.vlgmr.msra.gmra.mxu1 %vm302_vm0, %v517_v22 }
 0x235   : > { %1381 = vmatpush3.xpose.msk.msra.mxu1 %vm302_vm0, %v718_v23  ;;  %1382 = vmatprep.mubr.msk.f32.mxu1 %vm1679_vm1, %v1678_v0 }
 0x236   : > { %1390 = vmatprep.subr.mxu1 %v1678_v0 }
 0x238   : > { %1383 = vmatmul.mubr.msk.f32.vlgmr.msra.gmra.mxu1 %vm302_vm0, %v715_v24 }
 0x239   : > { %1391 = vmatpush3.xpose.msk.msra.mxu1 %vm302_vm0, %v916_v26  ;;  %1392 = vmatprep.mubr.msk.f32.mxu1 %vm1679_vm1, %v1678_v0  ;;  %v812_v26 = vld [vmem:[#allocation3 + $0x10] sm:$0xff] }
 0x23c   : > { %1393 = vmatmul.mubr.msk.f32.vlgmr.msra.gmra.mxu1 %vm302_vm0, %v913_v27 }
 0x2f0   : > { %v1936_v28 = vpop.f32.mrf.mxu1 }
 0x2f2   : > { %v1369_v29 = vpop.f32.mrf.mxu1 }
 0x2f4   : > { %v591_v30 = vpop.f32.mrf.mxu1 }
 0x2f5   : > { %v595_v31 = vsel %vm320_vm3, -inf, %v591_v30 }
 0x2f6   : > { %v1374_v32 = vpop.f32.mrf.mxu1  ;;  %v598_v33 = vsel %vm404_vm4, %v595_v31, -inf }
 0x2f7   : > { %599 = vmax.xlane.f32.xlu1 %v598_v33 }
 0x2f8   : > { %v789_v34 = vpop.f32.mrf.mxu1 }
 0x2f9   : > { %v793_v35 = vsel %vm320_vm3, -inf, %v789_v34 }
 0x2fa   : > { %v1384_v36 = vpop.f32.mrf.mxu1  ;;  %v796_v37 = vsel %vm404_vm4, %v793_v35, -inf }
 0x2fb   : > { %797 = vmax.xlane.f32.xlu0 %v796_v37  ;;  %v428_v37 = vld [vmem:[#allocation4] sm:$0xff] }
 0x2fc   : > { %v987_v38 = vpop.f32.mrf.mxu1 }
 0x2fd   : > { %v991_v39 = vsel %vm320_vm3, -inf, %v987_v38 }
 0x2fe   : > { %v1394_v40 = vpop.f32.mrf.mxu1  ;;  %v994_v41 = vsel %vm404_vm4, %v991_v39, -inf }
 0x2ff   : > { %995 = vmax.xlane.f32.xlu1 %v994_v41 }
 0x380   : > { %v600_v43 = vpop.xlane.xlu1 %599 }
 0x381   : > { %v601_v44 = vmax.f32 %v597_v42, %v600_v43 }
 0x383   : > { %v602_v46 = vsub.f32 %v597_v42, %v601_v44  ;;  %708 = vst.msk [vmem:[#allocation2 + $0x8] sm:$0xff] %vm293_vm2, %v601_v44  ;;  %607 = vperm.xlu1 %1480, %v601_v44  }
 0x384   : > { %v798_v47 = vpop.xlane.xlu0 %797 }
 0x385   : > { %v799_v48 = vmax.f32 %v795_v45, %v798_v47  ;;  %v603_v7 = vmul.f32 1.442695, %v602_v46  ;;  %v622_v46 = vld [vmem:[#allocation4 + $0x8] sm:$0xff] }
 0x387   : > { %v800_v50 = vsub.f32 %v795_v45, %v799_v48  ;;  %906 = vst.msk [vmem:[#allocation2 + $0x10] sm:$0xff] %vm293_vm2, %v799_v48  ;;  %805 = vperm.xlu0 %1479, %v799_v48  }
 0x388   : > { %v996_v51 = vpop.xlane.xlu1 %995 }
 0x389   : > { %v997_v52 = vmax.f32 %v993_v49, %v996_v51  ;;  %v801_v14 = vmul.f32 1.442695, %v800_v50 }
 0x38b   : > { %v998_v53 = vsub.f32 %v993_v49, %v997_v52  ;;  %1104 = vst.msk [vmem:[#allocation2 + $0x18] sm:$0xff] %vm293_vm2, %v997_v52  ;;  %1003 = vperm.xlu1 %1480, %v997_v52   ;;  %v820_v49 = vld [vmem:[#allocation4 + $0x10] sm:$0xff] }
 0x38d   : > { %v999_v10 = vmul.f32 1.442695, %v998_v53 }
 0x38f   : > { %630 = vrot.lane.b32.xlu1 %v324_v17, %s1682_s18 }
 0x393   : > { %828 = vrot.lane.b32.xlu1 %v324_v17, %s1683_s24 }
 0x397   : > { %1026 = vrot.lane.b32.xlu1 %v324_v17, %s1684_s5 }
 0x3bb   : > { %423 = vadd.xlane.f32.xlu1 %v422_v54 }
 0x3fe   : > { %v608_v55 = vpop.permute.xlu1 %607 }
 0x3ff   : > { %v610_v56 = vsub.f32 %v595_v31, %v608_v55  ;;  %v1010_v31 = vld [vmem:[#allocation3 + $0x18] sm:$0xff] }
 0x400   : > { %v1018_v55 = vld [vmem:[#allocation4 + $0x18] sm:$0xff] }
 0x401   : > { %v611_v57 = vmul.f32 1.442695, %v610_v56 }
 0x402   : > { %v806_v58 = vpop.permute.xlu0 %805 }
 0x403   : > { %1483 = vpow2.f32 %v611_v57  ;;  %v808_v59 = vsub.f32 %v793_v35, %v806_v58 }
 0x405   : > { %v809_v60 = vmul.f32 1.442695, %v808_v59 }
 0x406   : > { %v1004_v61 = vpop.permute.xlu1 %1003 }
 0x407   : > { %1485 = vpow2.f32 %v809_v60  ;;  %v1006_v62 = vsub.f32 %v991_v39, %v1004_v61 }
 0x409   : > { %v1007_v63 = vmul.f32 1.442695, %v1006_v62 }
 0x40a   : > { %v631_v1 = vpop.permute.xlu1 %630 }
 0x40b   : > { %1487 = vpow2.f32 %v1007_v63  ;;  %1376 = vmatpush3.msra.mxu0 %v631_v1 }
 0x40c   : > { %1385 = vmatprep.subr.mxu0 %v1678_v0  ;;  %1489 = vpow2.f32 %v603_v7 }
 0x40d   : > { %1491 = vpow2.f32 %v999_v10 }
 0x40e   : > { %v829_v2 = vpop.permute.xlu1 %828  ;;  %1493 = vpow2.f32 %v410_v12 }
 0x40f   : > { %1495 = vpow2.f32 %v801_v14 }
 0x410   : > { %v1484_v3 = vpop.eup %1483 }
 0x411   : > { %1378 = vmatmul.mubr.msk.f32.vlgmr.msra.gmra.mxu0 %vm404_vm4, %v1484_v3  ;;  %v616_v4 = vsel %vm404_vm4, %v1484_v3, 0.0 }
 0x412   : > { %617 = vadd.xlane.f32.xlu0 %v616_v4  ;;  %1386 = vmatpush3.msra.mxu0 %v829_v2  ;;  %v1027_v5 = vpop.permute.xlu1 %1026 }
 0x413   : > { %1387 = vmatprep.mubr.msk.f32.mxu0 %vm1679_vm1, %v1678_v0  ;;  %1395 = vmatprep.subr.mxu0 %v1678_v0 }
 0x414   : > { %v1486_v6 = vpop.eup %1485 }
 0x415   : > { %1388 = vmatmul.mubr.msk.f32.vlgmr.msra.gmra.mxu0 %vm404_vm4, %v1486_v6  ;;  %v814_v8 = vsel %vm404_vm4, %v1486_v6, 0.0 }
 0x416   : > { %815 = vadd.xlane.f32.xlu1 %v814_v8  ;;  %1396 = vmatpush3.msra.mxu0 %v1027_v5 }
 0x417   : > { %1397 = vmatprep.mubr.msk.f32.mxu0 %vm1679_vm1, %v1678_v0 }
 0x418   : > { %v1488_v9 = vpop.eup %1487 }
 0x419   : > { %1398 = vmatmul.mubr.msk.f32.vlgmr.msra.gmra.mxu0 %vm404_vm4, %v1488_v9  ;;  %v1012_v11 = vsel %vm404_vm4, %v1488_v9, 0.0  ;;  %v1490_v17 = vpop.eup %1489 }
 0x41a   : > { %1013 = vadd.xlane.f32.xlu0 %v1012_v11  ;;  %v1492_v18 = vpop.eup %1491  ;;  %v615_v16 = vmul.f32 %v1490_v17, %v614_v15 }
 0x41b   : > { %v1494_v0 = vpop.eup %1493  ;;  %v1011_v33 = vmul.f32 %v1492_v18, %v1010_v31 }
 0x41c   : > { %v1496_v19 = vpop.eup %1495  ;;  %v421_v21 = vmul.f32 %v1494_v0, %v420_v20 }
 0x41d   : > { %v813_v29 = vmul.f32 %v1496_v19, %v812_v26 }
 0x427   : > { %625 = vperm.xlu1 %1480, %v1490_v17  }
 0x42b   : > { %1021 = vperm.xlu1 %1480, %v1492_v18  }
 0x430   : > { %431 = vperm.xlu0 %1479, %v1494_v0  }
 0x434   : > { %823 = vperm.xlu0 %1479, %v1496_v19  }
 0x444   : > { %v424_v22 = vpop.xlane.xlu1 %423 }
 0x445   : > { %v425_v23 = vadd.f32 %v424_v22, %v421_v21 }
 0x447   : > { %427 = vst.msk [vmem:[#allocation3] sm:$0xff] %vm293_vm2, %v425_v23 }
 0x44e   : > { %v1108_v24 = vld [vmem:[#allocation3] sm:$0xff] }
 0x44f   : > { %1497 = vrcp.f32 %v1108_v24 }
 0x45c   : > { %v1498_v13 = vpop.eup %1497 }
 0x45d   : > { %1113 = vperm.xlu1 %1480, %v1498_v13  }
 0x49b   : > { %v618_v25 = vpop.xlane.xlu0 %617 }
 0x49c   : > { %v619_v27 = vadd.f32 %v618_v25, %v615_v16 }
 0x49e   : > { %620 = vst.msk [vmem:[#allocation3 + $0x8] sm:$0xff] %vm293_vm2, %v619_v27 }
 0x49f   : > { %v816_v30 = vpop.xlane.xlu1 %815 }
 0x4a0   : > { %v817_v32 = vadd.f32 %v816_v30, %v813_v29 }
 0x4a2   : > { %818 = vst.msk [vmem:[#allocation3 + $0x10] sm:$0xff] %vm293_vm2, %v817_v32 }
 0x4a3   : > { %v1014_v34 = vpop.xlane.xlu0 %1013  ;;  %v626_v47 = vpop.permute.xlu1 %625 }
 0x4a4   : > { %v1015_v35 = vadd.f32 %v1014_v34, %v1011_v33  ;;  %v628_v48 = vmul.f32 %v626_v47, %v622_v46 }
 0x4a5   : > { %v1120_v36 = vld [vmem:[#allocation3 + $0x8] sm:$0xff] }
 0x4a6   : > { %1016 = vst.msk [vmem:[#allocation3 + $0x18] sm:$0xff] %vm293_vm2, %v1015_v35  ;;  %1499 = vrcp.f32 %v1120_v36 }
 0x4a7   : > { %v1022_v54 = vpop.permute.xlu1 %1021 }
 0x4a8   : > { %v1024_v59 = vmul.f32 %v1022_v54, %v1018_v55 }
 0x4a9   : > { %v1137_v38 = vld [vmem:[#allocation3 + $0x10] sm:$0xff] }
 0x4aa   : > { %1501 = vrcp.f32 %v1137_v38 }
 0x4ab   : > { %v432_v39 = vpop.permute.xlu0 %431 }
 0x4ac   : > { %v434_v40 = vmul.f32 %v432_v39, %v428_v37 }
 0x4ad   : > { %v1154_v41 = vld [vmem:[#allocation3 + $0x18] sm:$0xff] }
 0x4ae   : > { %v508_v42 = vadd.f32 %v1936_v28, %v434_v40  ;;  %1503 = vrcp.f32 %v1154_v41 }
 0x4af   : > { %v824_v50 = vpop.permute.xlu0 %823 }
 0x4b0   : > { %509 = vst.msk [vmem:[#allocation4] sm:$0xff] %vm302_vm0, %v508_v42  ;;  %v826_v28 = vmul.f32 %v824_v50, %v820_v49 }
 0x4b3   : > { %v1500_v43 = vpop.eup %1499 }
 0x4b4   : > { %1126 = vperm.xlu0 %1479, %v1500_v43  }
 0x4b7   : > { %v1502_v44 = vpop.eup %1501  ;;  %v1110_v60 = vld [vmem:[#allocation4] sm:$0xff] }
 0x4b8   : > { %1143 = vperm.xlu0 %1479, %v1502_v44  }
 0x4bb   : > { %v1504_v45 = vpop.eup %1503 }
 0x4bc   : > { %1160 = vperm.xlu0 %1479, %v1504_v45  }
 0x4d1   : > { %v702_v51 = vpop.f32.mrf.mxu0 }
 0x4d2   : > { %v706_v52 = vadd.f32 %v702_v51, %v628_v48 }
 0x4d3   : > { %v1379_v53 = vpop.f32.mrf.mxu0 }
 0x4d4   : > { %707 = vst.msk [vmem:[#allocation4 + $0x8] sm:$0xff] %vm302_vm0, %v706_v52 }
 0x4d5   : > { %v900_v56 = vpop.f32.mrf.mxu0 }
 0x4d6   : > { %v904_v57 = vadd.f32 %v900_v56, %v826_v28 }
 0x4d7   : > { %v1389_v58 = vpop.f32.mrf.mxu0 }
 0x4d8   : > { %905 = vst.msk [vmem:[#allocation4 + $0x10] sm:$0xff] %vm302_vm0, %v904_v57  ;;  %v1114_v61 = vpop.permute.xlu1 %1113 }
 0x4d9   : > { %v1116_v62 = vmul.f32 %v1114_v61, %v1110_v60  ;;  %v1098_v63 = vpop.f32.mrf.mxu0 }
 0x4da   : > { %v1102_v1 = vadd.f32 %v1098_v63, %v1024_v59 }
 0x4db   : > { %1118 = vst.msk [vmem:[%s286_s6] sm:$0xff] %vm302_vm0, %v1116_v62  ;;  %v1399_v2 = vpop.f32.mrf.mxu0  ;;  %v1123_v3 = vld [vmem:[#allocation4 + $0x8] sm:$0xff] }
 0x4dc   : > { %1103 = vst.msk [vmem:[#allocation4 + $0x18] sm:$0xff] %vm302_vm0, %v1102_v1 }
 0x4df   : > { %v1140_v6 = vld [vmem:[#allocation4 + $0x10] sm:$0xff] }
 0x4e3   : > { %v1157_v9 = vld [vmem:[#allocation4 + $0x18] sm:$0xff] }
 0x52f   : > { %v1127_v4 = vpop.permute.xlu0 %1126 }
 0x530   : > { %v1129_v5 = vmul.f32 %v1127_v4, %v1123_v3 }
 0x532   : > { %1131 = vrot.lane.b32.xlu1 %v1129_v5, %s1684_s5 }
 0x533   : > { %v1144_v7 = vpop.permute.xlu0 %1143 }
 0x534   : > { %v1146_v8 = vmul.f32 %v1144_v7, %v1140_v6 }
 0x536   : > { %1148 = vrot.lane.b32.xlu1 %v1146_v8, %s1683_s24 }
 0x537   : > { %v1161_v10 = vpop.permute.xlu0 %1160 }
 0x538   : > { %v1163_v11 = vmul.f32 %v1161_v10, %v1157_v9 }
 0x53a   : > { %1165 = vrot.lane.b32.xlu1 %v1163_v11, %s1682_s18 }
 0x5a4   : > { %v1132_v12 = vpop.permute.xlu1 %1131 }
 0x5a5   : > { %1135 = vst.msk [vmem:[%s286_s6] sm:$0xff] %vm1134_vm5, %v1132_v12 }
 0x5a8   : > { %v1149_v14 = vpop.permute.xlu1 %1148 }
 0x5a9   : > { %1152 = vst.msk [vmem:[%s286_s6] sm:$0xff] %vm1151_vm6, %v1149_v14 }
 0x5ac   : > { %v1166_v17 = vpop.permute.xlu1 %1165 }
 0x5ad   : > { %1169 = vst.msk [vmem:[%s286_s6] sm:$0xff] %vm1168_vm7, %v1166_v17 }
 0x5ae   : > { %1602 = shalt.err (!%p1599_p12)
}
 0x5af   : > { %s1603_s4 = scalar_lea.hbm %s1990_s16, 128  ;;  %s1607_s28 = scalar_lea.hbm %s2035_s3, 256 }
 0x5b0   : > { %p1604_p1 = scmp.ne.s32.totalorder %s1990_s16, %s1603_s4  ;;  %p1608_p6 = scmp.lt.s32.totalorder %s1990_s16, %s2035_s3 }
 0x5b1   : > { %p1609_p7 = scmp.lt.s32.totalorder %s1607_s28, %s1603_s4 }
 0x5b2   : > { %p1605_p2 = pnand %p1604_p1, %p1761_p9 }
 0x5b3   : > { %p1610_p8 = por %p1609_p7, %p1608_p6 }
 0x5b4   : > { %p1606_p5 = pneg %p1605_p2 }
 0x5b6   : > { %p1611_p0 = pnand %p1610_p8, %p1606_p5 }
 0x5b8   : > { %1614 = shalt.err (!%p1611_p0)
}
 0x5b9   : > { %1406 = dma.vmem_to_hbm [thread:$0]  (%p1761_p9), %s1186_s7, 128, %s1990_s16, %s1171_s23  }
 0x5ba PF: > { %s1197_s18 = sand.u32 1, %s1653_s12   ;;  %p2050_p3 = scmp.ge.s32.totalorder %s1673_s17, 2 }
 0x5bb   : > { %s1198_s24 = scalar_lea.sflag [#allocation7], %s1197_s18 }
 0x5bc   : > { %p1419_p4 = pnand %p2050_p3, %p1768_p11 }
 0x5be   : > { %p1420_p10 = pneg %p1419_p4 }
 0x5c0   : > { %1648 = dma.done.wait (%p1420_p10), %s1198_s24, 128  }
 0x5c1   : > { %1650 = vsyncadd (%p1420_p10), %s1198_s24, 4294967168  ;;  %s22_s17 = sadd.s32 1, %s1673_s17   ;;  %s2051_s15 = sld [smem:[#allocation15_spill]] }
 0x5c2   : > { %p19_p13 = scmp.ge.s32.totalorder %s22_s17, 4   ;;  %s2052_s16 = sld [smem:[#allocation16_spill]] }
 0x5c3   : > { %s2053_s12 = smov %s1657_s13  ;;  %s2054_s13 = smov %s1661_s14 }
 0x5c4   : > { %s2055_s14 = smov %s1766_s26  ;;  %21 = sbr.rel (!%p19_p13) target bundleno = 10 (0xa), region = 128 }
 0x5c9   :  { %1203 = vsyncpa [#allocation6], 1 }
 0x5ca   :  { %1205 = vsyncpa [#allocation6 + $0x1], 1 }
 0x5cb   :  { %1206 = vsyncpa [#allocation9], 1 }
 0x5cc   :  { %1208 = vsyncpa [#allocation9 + $0x1], 1 }
 0x5cd   :  { %1209 = vsyncpa [#allocation7], 1 }
 0x5ce   :  { %1211 = vsyncpa [#allocation7 + $0x1], 1 }

</bundles_post_ra>
